<compile_context>
chip_gen: v5e
topology: v5e:2x2
jax: 0.10.0
libtpu: 0.0.40
codegen_flags: <defaults>
</compile_context>

<pallas_src>
import jax
import jax.numpy as jnp
from jax.experimental import pallas as pl
from jax.experimental.pallas import tpu as pltpu


def posterior_kernel(x_ref, w1_ref, b1_ref, w2_ref, b2_ref, out_ref):
    # First layer: single fused (D, 2H) MXU matmul + ReLU.
    h = jnp.dot(x_ref[...], w1_ref[...], preferred_element_type=jnp.float32)
    h = jnp.maximum(h + b1_ref[...], 0.0)                      # (TB, 2H) f32

    # Second layer on the idle MXU with a block-diagonal (2H, 2) weight:
    #   r[:, 0] = -pref_logit           (col 0 = -w2_pref, bias = -b2_pref)
    #   r[:, 1] =  exp_logit + gamma    (col 1 =  w2_exp,  bias = b2_exp + gamma)
    r = jnp.dot(h, w2_ref[...], preferred_element_type=jnp.float32) + b2_ref[...]
    er = jnp.exp(r)                                            # (TB, 2)
    e_negp = er[:, 0:1]      # exp(-pref_logit)
    e_odds = er[:, 1:2]      # exp(exp_logit + gamma)

    # posterior = sigmoid(p) / (1 + exp(e + gamma) * (1 - sigmoid(p)))
    #           = 1 / (1 + exp(-p) * (1 + exp(e + gamma)))
    out_ref[...] = 1.0 / (1.0 + e_negp * (1.0 + e_odds))


def posterior_forward(gamma, x, params_pref, params_exp, *,
                      block_batch=8192, use_bf16=False, vmem_limit_bytes=None):
    (w1p, b1p, w2p, b2p) = params_pref
    (w1e, b1e, w2e, b2e) = params_exp
    B, D = x.shape
    H = w1p.shape[1]
    f32 = jnp.float32

    # ---- wrapper-side fusion / folding (cheap one-time XLA ops) ----
    w1 = jnp.concatenate([w1p, w1e], axis=1).astype(f32)            # (D, 2H)
    b1 = jnp.concatenate([b1p, b1e], axis=1).astype(f32)            # (1, 2H)

    zeros_h = jnp.zeros((H, 1), f32)
    w2 = jnp.concatenate(
        [jnp.concatenate([-w2p.astype(f32), zeros_h], axis=1),      # pref rows
         jnp.concatenate([zeros_h, w2e.astype(f32)], axis=1)],      # exp rows
        axis=0)                                                     # (2H, 2)
    # gamma + output biases (and the pref-logit sign) folded into the bias row.
    b2 = jnp.concatenate([-b2p, b2e + gamma.reshape(1, 1)],
                         axis=1).astype(f32)                        # (1, 2)

    if use_bf16:
        # Halve the dominant HBM stream; MXU accumulates in f32.
        x = x.astype(jnp.bfloat16)
        w1 = w1.astype(jnp.bfloat16)

    # ---- batch tiling: no host-side padding, tail handled by block masking ----
    if block_batch >= B:
        tb = B                                   # single full-array block
    else:
        tb = max(8, (block_batch // 8) * 8)      # sublane-aligned tile
    steps = -(-B // tb)

    if steps > 1:
        # Deeper input pipelining on the x stream only (weights are resident).
        x_spec = pl.BlockSpec((tb, D), lambda i: (i, 0),
                              pipeline_mode=pl.Buffered(3))
    else:
        x_spec = pl.BlockSpec((tb, D), lambda i: (i, 0))

    const2d = lambda i: (0, 0)   # constant index -> weights stay VMEM-resident

    # ---- explicit VMEM budget (x/out tiles are lane-padded to 128 lanes) ----
    if vmem_limit_bytes is None:
        lane_padded_tile = tb * 128 * 4
        est = (3 + 2 + 3) * lane_padded_tile + (2 << 20)  # x bufs + out bufs + temps
        vmem_limit_bytes = int(min(max(est, 32 << 20), 56 << 20))

    out = pl.pallas_call(
        posterior_kernel,
        out_shape=jax.ShapeDtypeStruct((B, 1), jnp.float32),
        grid=(steps,),
        in_specs=[
            x_spec,                                   # x (pipelined stream)
            pl.BlockSpec((D, 2 * H), const2d),        # fused W1
            pl.BlockSpec((1, 2 * H), const2d),        # fused b1
            pl.BlockSpec((2 * H, 2), const2d),        # block-diagonal W2
            pl.BlockSpec((1, 2), const2d),            # fused b2 (+gamma, signs)
        ],
        out_specs=pl.BlockSpec((tb, 1), lambda i: (i, 0)),
        compiler_params=pltpu.CompilerParams(
            dimension_semantics=("parallel",),        # shards across TCs on v7x
            vmem_limit_bytes=vmem_limit_bytes),
    )(x, w1, b1, w2, b2)

    return out


def reference_forward(gamma, x, params_pref, params_exp):
    (w1p, b1p, w2p, b2p) = params_pref
    (w1e, b1e, w2e, b2e) = params_exp
    pref_logit = jnp.maximum(x @ w1p + b1p, 0.0) @ w2p + b2p
    exp_logit = jnp.maximum(x @ w1e + b1e, 0.0) @ w2e + b2e
    pref = jax.nn.sigmoid(pref_logit)
    odds = jnp.exp(exp_logit + gamma[0])
    return pref / (1.0 + odds * (1.0 - pref))


if __name__ == "__main__":
    D, H = 32, 64  # input features, hidden width per sub-model

    key = jax.random.PRNGKey(0)
    keys = jax.random.split(key, 12)

    # gamma ~ randn(1) (the only trainable param of Posterior)
    gamma = jax.random.normal(keys[0], (1,), dtype=jnp.float32)

    # frozen preference_model weights
    w1p = jax.random.normal(keys[1], (D, H), dtype=jnp.float32) * 0.1
    b1p = jax.random.normal(keys[2], (1, H), dtype=jnp.float32) * 0.1
    w2p = jax.random.normal(keys[3], (H, 1), dtype=jnp.float32) * 0.1
    b2p = jax.random.normal(keys[4], (1, 1), dtype=jnp.float32) * 0.1

    # frozen exposure_model weights
    w1e = jax.random.normal(keys[5], (D, H), dtype=jnp.float32) * 0.1
    b1e = jax.random.normal(keys[6], (1, H), dtype=jnp.float32) * 0.1
    w2e = jax.random.normal(keys[7], (H, 1), dtype=jnp.float32) * 0.1
    b2e = jax.random.normal(keys[8], (1, 1), dtype=jnp.float32) * 0.1

    params_pref = (w1p, b1p, w2p, b2p)
    params_exp = (w1e, b1e, w2e, b2e)

    # Case 1: tiny batch, single full-array block, exact f32 path.
    B1 = 8
    x1 = jax.random.normal(keys[9], (B1, D), dtype=jnp.float32)
    out1 = jax.block_until_ready(posterior_forward(gamma, x1, params_pref, params_exp))
    ref1 = reference_forward(gamma, x1, params_pref, params_exp)
    assert out1.shape == (B1, 1)
    assert jnp.allclose(out1, ref1, atol=1e-5, rtol=1e-5), (out1, ref1)

    # Case 2: multi-step grid with a non-dividing tail (no host-side padding).
    B2 = 300
    x2 = jax.random.normal(keys[10], (B2, D), dtype=jnp.float32)
    out2 = jax.block_until_ready(
        posterior_forward(gamma, x2, params_pref, params_exp, block_batch=128))
    ref2 = reference_forward(gamma, x2, params_pref, params_exp)
    assert out2.shape == (B2, 1)
    assert jnp.allclose(out2, ref2, atol=1e-5, rtol=1e-5), (out2, ref2)

    # Case 3: bf16 x/W1 streaming path (relaxed tolerance, f32 accumulation).
    out3 = jax.block_until_ready(
        posterior_forward(gamma, x2, params_pref, params_exp,
                          block_batch=128, use_bf16=True))
    assert out3.shape == (B2, 1)
    assert jnp.allclose(out3, ref2, atol=2e-2, rtol=2e-2), (out3, ref2)

    print("KERNEL_OK")
</pallas_src>

<mosaic_0001>
module attributes {stable_mosaic.version = 11 : i64} {
  func.func @posterior_kernel(%arg0: i32, %arg1: memref<8x32xf32, #tpu.memory_space<vmem>>, %arg2: memref<32x128xf32, #tpu.memory_space<vmem>>, %arg3: memref<1x128xf32, #tpu.memory_space<vmem>>, %arg4: memref<128x2xf32, #tpu.memory_space<vmem>>, %arg5: memref<1x2xf32, #tpu.memory_space<vmem>>, %arg6: memref<8x1xf32, #tpu.memory_space<vmem>>) attributes {dimension_semantics = [#tpu.dimension_semantics<parallel>], iteration_bounds = array<i64: 1>, scalar_prefetch = 0 : i64, scratch_operands = 0 : i64, tpu.core_type = #tpu.core_type<tc>, window_params = [{transform_indices = @transform_0, window_bounds = array<i64: 8, 32>}, {pipeline_mode = #tpu.pipeline_mode<synchronous>, transform_indices = @transform_1, window_bounds = array<i64: 32, 128>}, {pipeline_mode = #tpu.pipeline_mode<synchronous>, transform_indices = @transform_2, window_bounds = array<i64: 1, 128>}, {pipeline_mode = #tpu.pipeline_mode<synchronous>, transform_indices = @transform_3, window_bounds = array<i64: 128, 2>}, {pipeline_mode = #tpu.pipeline_mode<synchronous>, transform_indices = @transform_4, window_bounds = array<i64: 1, 2>}, {transform_indices = @transform_5, window_bounds = array<i64: 8, 1>}]} {
    %c0 = arith.constant 0 : index
    %c0_0 = arith.constant 0 : index
    %0 = vector.load %arg1[%c0, %c0_0] : memref<8x32xf32, #tpu.memory_space<vmem>>, vector<8x32xf32>
    %c0_1 = arith.constant 0 : index
    %c0_2 = arith.constant 0 : index
    %1 = vector.load %arg2[%c0_1, %c0_2] : memref<32x128xf32, #tpu.memory_space<vmem>>, vector<32x128xf32>
    %cst = arith.constant dense<0.000000e+00> : vector<8x128xf32>
    %2 = tpu.matmul %0, %1, %cst {dimension_numbers = #tpu.dot_dimension_numbers<[1], [0], [0], [1], [0, 0, 1, 1], [], []>} : vector<8x32xf32>, vector<32x128xf32>, vector<8x128xf32> -> vector<8x128xf32>
    %c0_3 = arith.constant 0 : index
    %c0_4 = arith.constant 0 : index
    %3 = vector.load %arg3[%c0_3, %c0_4] : memref<1x128xf32, #tpu.memory_space<vmem>>, vector<1x128xf32>
    %4 = vector.broadcast %3 : vector<1x128xf32> to vector<8x128xf32>
    %5 = arith.addf %2, %4 : vector<8x128xf32>
    %cst_5 = arith.constant 0.000000e+00 : f32
    %6 = vector.broadcast %cst_5 : f32 to vector<8x128xf32>
    %7 = arith.maximumf %5, %6 : vector<8x128xf32>
    %c0_6 = arith.constant 0 : index
    %c0_7 = arith.constant 0 : index
    %8 = vector.load %arg4[%c0_6, %c0_7] : memref<128x2xf32, #tpu.memory_space<vmem>>, vector<128x2xf32>
    %cst_8 = arith.constant dense<0.000000e+00> : vector<8x2xf32>
    %9 = tpu.matmul %7, %8, %cst_8 {dimension_numbers = #tpu.dot_dimension_numbers<[1], [0], [0], [1], [0, 0, 1, 1], [], []>} : vector<8x128xf32>, vector<128x2xf32>, vector<8x2xf32> -> vector<8x2xf32>
    %c0_9 = arith.constant 0 : index
    %c0_10 = arith.constant 0 : index
    %10 = vector.load %arg5[%c0_9, %c0_10] : memref<1x2xf32, #tpu.memory_space<vmem>>, vector<1x2xf32>
    %11 = vector.broadcast %10 : vector<1x2xf32> to vector<8x2xf32>
    %12 = arith.addf %9, %11 : vector<8x2xf32>
    %13 = math.exp %12 : vector<8x2xf32>
    %14 = vector.extract_strided_slice %13 {offsets = [0, 0], sizes = [8, 1], strides = [1, 1]} : vector<8x2xf32> to vector<8x1xf32>
    %15 = vector.extract_strided_slice %13 {offsets = [0, 1], sizes = [8, 1], strides = [1, 1]} : vector<8x2xf32> to vector<8x1xf32>
    %cst_11 = arith.constant 1.000000e+00 : f32
    %16 = vector.broadcast %cst_11 : f32 to vector<8x1xf32>
    %17 = arith.addf %16, %15 : vector<8x1xf32>
    %18 = arith.mulf %14, %17 : vector<8x1xf32>
    %cst_12 = arith.constant 1.000000e+00 : f32
    %19 = vector.broadcast %cst_12 : f32 to vector<8x1xf32>
    %20 = arith.addf %19, %18 : vector<8x1xf32>
    %cst_13 = arith.constant 1.000000e+00 : f32
    %21 = vector.broadcast %cst_13 : f32 to vector<8x1xf32>
    %22 = arith.divf %21, %20 : vector<8x1xf32>
    %c0_14 = arith.constant 0 : index
    %c0_15 = arith.constant 0 : index
    %23 = vector.load %arg6[%c0_14, %c0_15] : memref<8x1xf32, #tpu.memory_space<vmem>>, vector<8x1xf32>
    tpu.vector_store %arg6[%c0_14, %c0_15], %22 {strides = array<i32>} : memref<8x1xf32, #tpu.memory_space<vmem>>, vector<8x1xf32>,
    return
  }
  func.func @transform_0(%arg0: i32) -> (i32, i32) {
    %c0_i32 = arith.constant 0 : i32
    %c0_i32_0 = arith.constant 0 : i32
    return %arg0, %c0_i32 : i32, i32
  }
  func.func @transform_1(%arg0: i32) -> (i32, i32) {
    %c0_i32 = arith.constant 0 : i32
    %c0_i32_0 = arith.constant 0 : i32
    %c0_i32_1 = arith.constant 0 : i32
    return %c0_i32, %c0_i32_0 : i32, i32
  }
  func.func @transform_2(%arg0: i32) -> (i32, i32) {
    %c0_i32 = arith.constant 0 : i32
    %c0_i32_0 = arith.constant 0 : i32
    %c0_i32_1 = arith.constant 0 : i32
    return %c0_i32, %c0_i32_0 : i32, i32
  }
  func.func @transform_3(%arg0: i32) -> (i32, i32) {
    %c0_i32 = arith.constant 0 : i32
    %c0_i32_0 = arith.constant 0 : i32
    %c0_i32_1 = arith.constant 0 : i32
    return %c0_i32, %c0_i32_0 : i32, i32
  }
  func.func @transform_4(%arg0: i32) -> (i32, i32) {
    %c0_i32 = arith.constant 0 : i32
    %c0_i32_0 = arith.constant 0 : i32
    %c0_i32_1 = arith.constant 0 : i32
    return %c0_i32, %c0_i32_0 : i32, i32
  }
  func.func @transform_5(%arg0: i32) -> (i32, i32) {
    %c0_i32 = arith.constant 0 : i32
    %c0_i32_0 = arith.constant 0 : i32
    return %arg0, %c0_i32 : i32, i32
  }
}

</mosaic_0001>

<bundles_post_ra>
// kernel: tpu_custom_call.1
= control target key start
LH: loop header
LB: loop body
LE: loop exit
PB: predicated region body
PF: predicated region fallthrough
CT: control target
= control target key end

     0   :  { %vm29_vm0 = vcmask 261120   ;;  %vm118_vm4 = vcmask 7168   ;;  %s235_s1 = inlined_call_operand.vmem [shape: f32[32,128], index: 1, kind: input, shape index: {}]   ;;  %s236_s3 = inlined_call_operand.vmem [shape: f32[128,2], index: 3, kind: input, shape index: {}]   ;;  %s237_s0 = inlined_call_operand.vmem [shape: f32[8,32], index: 0, kind: input, shape index: {}]   ;;  %s238_s2 = inlined_call_operand.vmem [shape: f32[1,128], index: 2, kind: input, shape index: {}]   ;;  %s239_s4 = inlined_call_operand.vmem [shape: f32[1,2], index: 4, kind: input, shape index: {}]   ;;  %s240_s5 = inlined_call_operand.vmem [shape: f32[8,1], index: 5, kind: output, shape index: {}]  }
   0x1   :  { %v24_v0 = vld [vmem:[%s235_s1 + $0x18] sm:$0xff]  ;;  %v23_v1 = vld [vmem:[%s235_s1 + $0x10] sm:$0xff]  ;;  %v22_v3 = vld [vmem:[%s235_s1 + $0x8] sm:$0xff] }
   0x2   :  { %45 = vmatpush.msra.mxu0 %v24_v0  ;;  %v69_v2 = vld [vmem:[%s236_s3 + $0x78] sm:$0xff]  ;;  %v68_v4 = vld [vmem:[%s236_s3 + $0x70] sm:$0xff]  ;;  %v67_v5 = vld [vmem:[%s236_s3 + $0x68] sm:$0xff] }
   0x3   :  { %74 = vmatpush.msra.mxu1 %v69_v2  ;;  %v21_v6 = vld [vmem:[%s235_s1] sm:$0xff]  ;;  %v65_v9 = vld [vmem:[%s236_s3 + $0x58] sm:$0xff]  ;;  %v64_v10 = vld [vmem:[%s236_s3 + $0x50] sm:$0xff] }
   0x4   :  { %46 = vmatpush.msra.mxu0 %v23_v1  ;;  %v20_v7 = vld [vmem:[%s237_s0] sm:$0xff]  ;;  %v63_v11 = vld [vmem:[%s236_s3 + $0x48] sm:$0xff]  ;;  %v61_v13 = vld [vmem:[%s236_s3 + $0x38] sm:$0xff] }
   0x5   :  { %75 = vmatpush.msra.mxu1 %v68_v4  ;;  %v66_v8 = vld [vmem:[%s236_s3 + $0x60] sm:$0xff]  ;;  %v60_v14 = vld [vmem:[%s236_s3 + $0x30] sm:$0xff]  ;;  %v59_v15 = vld [vmem:[%s236_s3 + $0x28] sm:$0xff] }
   0x6   :  { %47 = vmatpush.msra.mxu0 %v22_v3  ;;  %v62_v12 = vld [vmem:[%s236_s3 + $0x40] sm:$0xff]  ;;  %v57_v17 = vld [vmem:[%s236_s3 + $0x18] sm:$0xff]  ;;  %v56_v18 = vld [vmem:[%s236_s3 + $0x10] sm:$0xff] }
   0x7   :  { %76 = vmatpush.msra.mxu1 %v67_v5  ;;  %v58_v16 = vld [vmem:[%s236_s3 + $0x20] sm:$0xff]  ;;  %v55_v19 = vld [vmem:[%s236_s3 + $0x8] sm:$0xff] }
   0x8   :  { %48 = vmatpush.msra.mxu0 %v21_v6  ;;  %v54_v20 = vld [vmem:[%s236_s3] sm:$0xff]  ;;  %s132_s3 = smov 127  }
   0x9   :  { %124 = vmatmul.msk.f32.vlgmr.msra.gmra.mxu0 %vm29_vm0, %v20_v7  ;;  %77 = vmatpush.msra.mxu1 %v66_v8  ;;  %v126_v21 = vld [vmem:[%s238_s2] ss:$0 sm:$0xff] }
   0xa   :  { %v127_v25 = vld [vmem:[%s239_s4] ss:$0 sm:$0xff] }
   0xb   :  { %78 = vmatpush.msra.mxu1 %v65_v9 }
   0xd   :  { %79 = vmatpush.msra.mxu1 %v64_v10 }
   0xf   :  { %80 = vmatpush.msra.mxu1 %v63_v11 }
  0x11   :  { %81 = vmatpush.msra.mxu1 %v62_v12 }
  0x13   :  { %82 = vmatpush.msra.mxu1 %v61_v13 }
  0x15   :  { %83 = vmatpush.msra.mxu1 %v60_v14 }
  0x17   :  { %84 = vmatpush.msra.mxu1 %v59_v15 }
  0x19   :  { %85 = vmatpush.msra.mxu1 %v58_v16 }
  0x1b   :  { %86 = vmatpush.msra.mxu1 %v57_v17 }
  0x1d   :  { %87 = vmatpush.msra.mxu1 %v56_v18 }
  0x1f   :  { %88 = vmatpush.msra.mxu1 %v55_v19 }
  0x21   :  { %89 = vmatpush.msra.mxu1 %v54_v20 }
  0x86   :  { %v50_v22 = vpop.f32.mrf.mxu0 }
  0x87   :  { %v51_v23 = vadd.f32 %v126_v21, %v50_v22 }
  0x89   :  { %v53_v24 = vmax.f32 %v51_v23, 0.0 }
  0x8b   :  { %90 = vmatmul.f32.vlgmr.msra.gmra.mxu1 %v53_v24 }
 0x108   :  { %v91_v26 = vpop.f32.mrf.mxu1 }
 0x109   :  { %v92_v27 = vadd.f32 %v127_v25, %v91_v26 }
 0x10b   :  { %v94_v28 = vmul.f32 1.442695, %v92_v27 }
 0x10d   :  { %128 = vpow2.f32 %v94_v28 }
 0x113   :  { %v129_v29 = vpop.eup %128 }
 0x114   :  { %v96_v30 = vadd.f32 1.0, %v129_v29 }
 0x116   :  { %98 = vrot.lane.b32.xlu0 %v96_v30, %s132_s3 }
 0x188   :  { %v99_v31 = vpop.permute.xlu0 %98 }
 0x189   :  { %v101_v32 = vmul.f32 %v129_v29, %v99_v31 }
 0x18b   :  { %v102_v33 = vadd.f32 1.0, %v101_v32 }
 0x18d   :  { %130 = vrcp.f32 %v102_v33  ;;  %v114_v37 = vand.u32 2147483648, %v102_v33  ;;  %v112_v39 = vand.u32 2147483647, %v102_v33  ;;  %vm108_vm2 = vweird.f32 %v102_v33 }
 0x18f   :  { %v115_v41 = vor.u32 1.1754944e-38, %v114_v37  ;;  %vm113_vm5 = vcmp.eq.f32.partialorder %v112_v39, 8.507059e+37 }
 0x193   :  { %v131_v34 = vpop.eup %130 }
 0x194   :  { %v104_v35 = vmul.f32 %v131_v34, %v102_v33  ;;  %vm109_vm1 = vweird.f32 %v131_v34 }
 0x195   :  { %vm110_vm3 = vmor %vm108_vm2, %vm109_vm1 }
 0x196   :  { %v105_v36 = vsub.f32 1.0, %v104_v35 }
 0x198   :  { %v106_v38 = vmul.f32 %v131_v34, %v105_v36 }
 0x19a   :  { %v107_v40 = vadd.f32 %v131_v34, %v106_v38 }
 0x19c   :  { %v111_v42 = vsel %vm110_vm3, %v131_v34, %v107_v40 }
 0x19d   :  { %v116_v43 = vsel %vm113_vm5, %v115_v41, %v111_v42 }
 0x19e   :  { %119 = vst.msk [vmem:[%s240_s5] sm:$0xff] %vm118_vm4, %v116_v43 }

</bundles_post_ra>
